<compile_context>
chip_gen: v7x
topology: tpu7x:2x2x1
jax: 0.10.0
libtpu: 0.0.40
codegen_flags: <defaults>
</compile_context>

<pallas_src>
import functools

import jax
import jax.numpy as jnp
import numpy as np
from jax.experimental import pallas as pl
from jax.experimental.pallas import tpu as pltpu


def _round_up(x, m):
    return (x + m - 1) // m * m


def _vmem_limit_bytes():
    """Generation-aware scoped-VMEM limit: ~3/4 of physical per-TC VMEM,
    capped at 100 MiB (v5e/v6e have 128 MiB, v7x only 64 MiB per TC)."""
    cap = 64 * 1024 * 1024  # safe fallback (fits every generation)
    try:
        info = pltpu.get_tpu_info()
        cap = int(getattr(info, "vmem_capacity_bytes", cap))
    except Exception:
        pass
    return max(32 * 1024 * 1024, min(cap * 3 // 4, 100 * 1024 * 1024))


def _choose_tile(n, target, granule):
    """Largest tile <= target that divides n and is a multiple of `granule`.
    Falls back to the full extent (block dim == array dim is always legal)."""
    if n <= target:
        return n
    t = (min(target, n) // granule) * granule
    while t >= granule:
        if n % t == 0:
            return t
        t -= granule
    return n


def _proj_kernel(x_ref, w_ref, ft_ref, aux_ref, *, fused_cols):
    # x_ref  : (TMp, Din) f32
    # w_ref  : (Din, H*Dout + 2H) f32   [all heads' W | W@attn_r | W@attn_l]
    # ft_ref : (TMp, H*Dout) bf16       lane-dense projected features
    # aux_ref: (TMp, 2H) f32            [er | el]
    p = jnp.dot(x_ref[...], w_ref[...], preferred_element_type=jnp.float32)
    ft_ref[...] = p[:, :fused_cols].astype(ft_ref.dtype)   # one full-width store
    aux_ref[...] = p[:, fused_cols:]


def _attn_kernel(adj_ref, er_ref, el_ref, ft_ref, out_ref,
                 m_scr, l_scr, acc_scr, *, num_heads, out_feats,
                 negative_slope, src_tile, ft_resident):
    # adj_ref: (TM, TK) int8             adj[dst, src]
    # er_ref : (TM, H)  f32              destination-side attention term
    # el_ref : (H, TK)  f32              source-side term (precomputed, src along lanes)
    # ft_ref : (N, H*Dout) bf16 if resident, else (TK, H*Dout) bf16
    # out_ref: (TM, H*Dout) f32          lane-dense output slab
    # m_scr, l_scr: (H, TM, 1) f32 ; acc_scr: (H, TM, Dout) f32
    k = pl.program_id(1)
    nk = pl.num_programs(1)

    @pl.when(k == 0)
    def _init():
        # m starts at 0 (not -inf): softmax is shift invariant and m_new >= 0
        # guarantees exp(e - m_new) never overflows; masked entries (e = -1e30)
        # underflow exp to exactly 0, so no masked select on p is needed.
        m_scr[...] = jnp.zeros_like(m_scr)
        l_scr[...] = jnp.zeros_like(l_scr)
        acc_scr[...] = jnp.zeros_like(acc_scr)

    mask = adj_ref[...] > 0                       # (TM, TK) shared by all heads
    er_all = er_ref[...]                          # (TM, H)
    el_all = el_ref[...]                          # (H, TK)

    if ft_resident:
        src0 = pl.multiple_of(k * src_tile, src_tile)
        ft_all = ft_ref[pl.ds(src0, src_tile), :]  # (TK, H*Dout) bf16, from resident slab
    else:
        ft_all = ft_ref[...]                       # (TK, H*Dout) bf16, streamed tile

    neg = jnp.float32(-1e30)
    ns = jnp.float32(negative_slope)

    # TODO(synk): for large head counts convert this static unroll to a
    # lax.fori_loop (bounded live ranges); H is small here so unrolling is fine.
    for h in range(num_heads):
        e = er_all[:, h:h + 1] + el_all[h:h + 1, :]   # (TM, TK): er[dst] + el[src]
        e = jnp.where(e > 0, e, ns * e)               # LeakyReLU
        e = jnp.where(mask, e, neg)                   # mask non-edges

        m_prev = m_scr[h]                             # (TM, 1)
        m_new = jnp.maximum(m_prev, jnp.max(e, axis=1, keepdims=True))
        alpha = jnp.exp(m_prev - m_new)               # (TM, 1)
        p = jnp.exp(e - m_new)                        # (TM, TK); non-edges -> exactly 0

        # TODO(synk): the row-sum could be folded into the accumulate matmul via a
        # ones column on the RHS; kept as an XLU reduction to preserve the
        # lane-dense (multiple-of-128) ft layout.
        l_scr[h] = alpha * l_scr[h] + jnp.sum(p, axis=1, keepdims=True)

        ft_h = ft_all[:, h * out_feats:(h + 1) * out_feats]          # (TK, Dout) bf16
        acc_scr[h] = alpha * acc_scr[h] + jnp.dot(
            p.astype(jnp.bfloat16), ft_h, preferred_element_type=jnp.float32)
        m_scr[h] = m_new

    @pl.when(k == nk - 1)
    def _finalize():
        pieces = []
        for h in range(num_heads):
            l_h = jnp.maximum(l_scr[h], 1e-20)            # isolated dst: l=0 -> out 0
            inv = pl.reciprocal(l_h, approx=True)         # EUP slot
            inv = inv * (2.0 - l_h * inv)                 # one Newton step -> ~f32
            pieces.append(acc_scr[h] * inv)               # (TM, Dout)
        # Lane-dense full-width store of the whole (TM, H*Dout) slab.
        out_ref[...] = jnp.concatenate(pieces, axis=1).astype(out_ref.dtype)


def gat_layer(feat, w_heads, attn_l, attn_r, adj, negative_slope=0.2,
              *, row_tile=512, dst_tile=512, src_tile=512, ft_resident=None):
    """Pallas GAT forward. Returns (N, H, Dout) like the PyTorch module
    (feat_drop = attn_drop = 0, residual = False, activation = None)."""
    N, Din = feat.shape
    H, _, Dout = w_heads.shape
    assert adj.shape == (N, N)
    assert N % 8 == 0, "N must be a multiple of 8"

    vmem_limit = _vmem_limit_bytes()

    feat = feat.astype(jnp.float32)
    # int8 adjacency mask: 4x less HBM traffic / VMEM than f32.
    # TODO(synk): bit-pack adjacency to 1 bit/edge for very large N on v5e.
    adj_i8 = (adj != 0).astype(jnp.int8)

    # Pack [all heads' W | W@attn_r | W@attn_l] so the projection is one
    # lane-dense MXU matmul and er/el fall out of the same matmul for free.
    w_ft = jnp.transpose(w_heads, (1, 0, 2)).reshape(Din, H * Dout)
    w_r = jnp.einsum("hdo,ho->dh", w_heads, attn_r[:, 0, :])
    w_l = jnp.einsum("hdo,ho->dh", w_heads, attn_l[:, 0, :])
    w_packed = jnp.concatenate([w_ft, w_r, w_l], axis=1).astype(jnp.float32)

    tmp = _choose_tile(N, row_tile, 8)     # projection row tile
    tm = _choose_tile(N, dst_tile, 32)     # dst tile (32: int8 sublane granule)
    tk = _choose_tile(N, src_tile, 128)    # src tile (128: lane granule)

    # ---- pass 1: projection (all heads + folded er/el in one matmul) ----
    ft, er_el = pl.pallas_call(
        functools.partial(_proj_kernel, fused_cols=H * Dout),
        grid=(N // tmp,),
        in_specs=[
            pl.BlockSpec((tmp, Din), lambda r: (r, 0)),
            pl.BlockSpec((Din, H * Dout + 2 * H), lambda r: (0, 0)),
        ],
        out_specs=[
            pl.BlockSpec((tmp, H * Dout), lambda r: (r, 0)),
            pl.BlockSpec((tmp, 2 * H), lambda r: (r, 0)),
        ],
        out_shape=[
            jax.ShapeDtypeStruct((N, H * Dout), jnp.bfloat16),   # lane-dense ft
            jax.ShapeDtypeStruct((N, 2 * H), jnp.float32),       # [er | el]
        ],
        compiler_params=pltpu.CompilerParams(
            dimension_semantics=("parallel",),
            vmem_limit_bytes=vmem_limit),
    )(feat, w_packed)

    er = er_el[:, :H]                # (N, H)  dst-side term
    el_t = er_el[:, H:].T            # (H, N)  src-side term, src along lanes (tiny copy)

    # ---- decide whether ft can live resident in VMEM for the whole pass 2 ----
    hd_pad = _round_up(H * Dout, 128)
    fixed = (2 * tm * tk                         # adj int8, double-buffered
             + 2 * tm * 128 * 4                  # er tiles
             + 2 * _round_up(H, 8) * tk * 4      # el tiles
             + 2 * tm * hd_pad * 4               # output slab
             + 2 * H * tm * 128 * 4              # m, l scratch (lane padded)
             + H * tm * _round_up(Dout, 128) * 4)  # acc scratch
    temps = 3 * tm * tk * 4                      # per-step f32 score temporaries
    ft_res_bytes = 2 * _round_up(N, 16) * hd_pad * 2      # bf16, double-buffer estimate
    if ft_resident is None:
        ft_resident = (fixed + temps + ft_res_bytes) <= int(vmem_limit * 0.8)
    ft_resident = bool(ft_resident)

    ft_spec = (pl.BlockSpec((N, H * Dout), lambda i, k: (0, 0)) if ft_resident
               else pl.BlockSpec((tk, H * Dout), lambda i, k: (k, 0)))

    # ---- pass 2: dst-tiled attention with online softmax over src tiles ----
    out_flat = pl.pallas_call(
        functools.partial(_attn_kernel, num_heads=H, out_feats=Dout,
                          negative_slope=negative_slope,
                          src_tile=tk, ft_resident=ft_resident),
        grid=(N // tm, N // tk),
        in_specs=[
            pl.BlockSpec((tm, tk), lambda i, k: (i, k)),     # adj tile (int8)
            pl.BlockSpec((tm, H), lambda i, k: (i, 0)),      # er (dst rows)
            pl.BlockSpec((H, tk), lambda i, k: (0, k)),      # el (src lanes)
            ft_spec,                                         # ft (bf16, lane-dense)
        ],
        out_specs=pl.BlockSpec((tm, H * Dout), lambda i, k: (i, 0)),
        out_shape=jax.ShapeDtypeStruct((N, H * Dout), jnp.float32),
        scratch_shapes=[
            pltpu.VMEM((H, tm, 1), jnp.float32),      # running max
            pltpu.VMEM((H, tm, 1), jnp.float32),      # running denom
            pltpu.VMEM((H, tm, Dout), jnp.float32),   # running numerator
        ],
        compiler_params=pltpu.CompilerParams(
            dimension_semantics=("parallel", "arbitrary"),
            vmem_limit_bytes=vmem_limit),
    )(adj_i8, er, el_t, ft)

    # Row-major split of the last dim: metadata-only reshape, no HBM transpose.
    return out_flat.reshape(N, H, Dout)


def gat_layer_ref(feat, w_heads, attn_l, attn_r, adj, negative_slope=0.2):
    """Pure-JAX reference (mirrors DGL semantics) for correctness check."""
    hi = jax.lax.Precision.HIGHEST
    ft = jnp.einsum("nd,hdo->nho", feat, w_heads, precision=hi)    # (N, H, Dout)
    al = attn_l[:, 0, :]
    ar = attn_r[:, 0, :]
    el = jnp.einsum("nho,ho->nh", ft, al, precision=hi)            # (N, H)
    er = jnp.einsum("nho,ho->nh", ft, ar, precision=hi)            # (N, H)
    e = er[:, None, :] + el[None, :, :]                            # (Ndst, Nsrc, H)
    e = jnp.where(e > 0, e, negative_slope * e)
    mask = (adj != 0)[:, :, None]
    e = jnp.where(mask, e, -1e30)
    m = jnp.max(e, axis=1, keepdims=True)
    p = jnp.where(mask, jnp.exp(e - m), 0.0)
    s = jnp.sum(p, axis=1, keepdims=True)
    a = p / jnp.maximum(s, 1e-20)
    return jnp.einsum("ijh,jho->iho", a, ft, precision=hi)         # (N, H, Dout)


if __name__ == "__main__":
    # Small shapes that still exercise the tiled / online-softmax path
    # (2 dst tiles x 2 src tiles, 2 projection row tiles, H*Dout = 128 lanes).
    N, IN_FEATS, OUT_FEATS, NUM_HEADS = 256, 32, 32, 4
    NEG_SLOPE = 0.2

    key = jax.random.PRNGKey(0)
    k_feat, k_fc, k_al, k_ar, k_adj = jax.random.split(key, 5)

    feat = jax.random.normal(k_feat, (N, IN_FEATS), dtype=jnp.float32)

    # Deterministic xavier_normal-style init (gain = sqrt(2), like calculate_gain('relu')).
    gain = np.sqrt(2.0)
    fc_std = gain * np.sqrt(2.0 / (IN_FEATS + NUM_HEADS * OUT_FEATS))
    fc_w = fc_std * jax.random.normal(
        k_fc, (NUM_HEADS * OUT_FEATS, IN_FEATS), dtype=jnp.float32)   # nn.Linear.weight
    # fc(x) = x @ fc_w.T, view(N, H, Dout)  ==>  per-head weight (H, Din, Dout)
    w_heads = jnp.transpose(fc_w.reshape(NUM_HEADS, OUT_FEATS, IN_FEATS), (0, 2, 1))

    attn_std = gain * np.sqrt(2.0 / (NUM_HEADS * OUT_FEATS + OUT_FEATS))
    attn_l = attn_std * jax.random.normal(k_al, (NUM_HEADS, 1, OUT_FEATS), dtype=jnp.float32)
    attn_r = attn_std * jax.random.normal(k_ar, (NUM_HEADS, 1, OUT_FEATS), dtype=jnp.float32)

    # Random sparse adjacency adj[dst, src] with self-loops, stored int8.
    adj = (jax.random.uniform(k_adj, (N, N)) < 0.05).astype(jnp.int8)
    adj = jnp.maximum(adj, jnp.eye(N, dtype=jnp.int8))
    adj = adj.at[5, :].set(0)   # one isolated destination (tests the l=0 -> output 0 path)

    ref = gat_layer_ref(feat, w_heads, attn_l, attn_r, adj, NEG_SLOPE)

    # Resident-ft path (auto-selected: ft easily fits VMEM at this size).
    out = gat_layer(feat, w_heads, attn_l, attn_r, adj, NEG_SLOPE,
                    row_tile=128, dst_tile=128, src_tile=128)
    out = jax.block_until_ready(out)
    assert out.shape == (N, NUM_HEADS, OUT_FEATS)
    # bf16 ft / bf16 attention-weight matmul inputs (f32 accumulate) -> looser tolerance.
    np.testing.assert_allclose(np.asarray(out), np.asarray(ref), rtol=2e-2, atol=1e-2)

    # Streamed-ft path (forced), to exercise the fallback for very large graphs.
    out_s = gat_layer(feat, w_heads, attn_l, attn_r, adj, NEG_SLOPE,
                      row_tile=128, dst_tile=128, src_tile=128, ft_resident=False)
    out_s = jax.block_until_ready(out_s)
    np.testing.assert_allclose(np.asarray(out_s), np.asarray(ref), rtol=2e-2, atol=1e-2)

    print("KERNEL_OK")
</pallas_src>

<mosaic_0001>
module attributes {stable_mosaic.version = 11 : i64} {
  func.func @_proj_kernel(%arg0: i32, %arg1: memref<128x32xf32, #tpu.memory_space<vmem>>, %arg2: memref<32x136xf32, #tpu.memory_space<vmem>>, %arg3: memref<128x128xbf16, #tpu.memory_space<vmem>>, %arg4: memref<128x8xf32, #tpu.memory_space<vmem>>) attributes {dimension_semantics = [#tpu.dimension_semantics<parallel>], iteration_bounds = array<i64: 2>, scalar_prefetch = 0 : i64, scratch_operands = 0 : i64, tpu.core_type = #tpu.core_type<tc>, window_params = [{transform_indices = @transform_0, window_bounds = array<i64: 128, 32>}, {pipeline_mode = #tpu.pipeline_mode<synchronous>, transform_indices = @transform_1, window_bounds = array<i64: 32, 136>}, {transform_indices = @transform_2, window_bounds = array<i64: 128, 128>}, {transform_indices = @transform_3, window_bounds = array<i64: 128, 8>}]} {
    %c0 = arith.constant 0 : index
    %c0_0 = arith.constant 0 : index
    %0 = vector.load %arg1[%c0, %c0_0] : memref<128x32xf32, #tpu.memory_space<vmem>>, vector<128x32xf32>
    %c0_1 = arith.constant 0 : index
    %c0_2 = arith.constant 0 : index
    %1 = vector.load %arg2[%c0_1, %c0_2] : memref<32x136xf32, #tpu.memory_space<vmem>>, vector<32x136xf32>
    %cst = arith.constant dense<0.000000e+00> : vector<128x136xf32>
    %2 = tpu.matmul %0, %1, %cst {dimension_numbers = #tpu.dot_dimension_numbers<[1], [0], [0], [1], [0, 0, 1, 1], [], []>} : vector<128x32xf32>, vector<32x136xf32>, vector<128x136xf32> -> vector<128x136xf32>
    %3 = vector.extract_strided_slice %2 {offsets = [0, 0], sizes = [128, 128], strides = [1, 1]} : vector<128x136xf32> to vector<128x128xf32>
    %4 = arith.truncf %3 : vector<128x128xf32> to vector<128x128xbf16>
    %c0_3 = arith.constant 0 : index
    %c0_4 = arith.constant 0 : index
    %5 = vector.load %arg3[%c0_3, %c0_4] : memref<128x128xbf16, #tpu.memory_space<vmem>>, vector<128x128xbf16>
    tpu.vector_store %arg3[%c0_3, %c0_4], %4 {strides = array<i32>} : memref<128x128xbf16, #tpu.memory_space<vmem>>, vector<128x128xbf16>,
    %6 = vector.extract_strided_slice %2 {offsets = [0, 128], sizes = [128, 8], strides = [1, 1]} : vector<128x136xf32> to vector<128x8xf32>
    %c0_5 = arith.constant 0 : index
    %c0_6 = arith.constant 0 : index
    %7 = vector.load %arg4[%c0_5, %c0_6] : memref<128x8xf32, #tpu.memory_space<vmem>>, vector<128x8xf32>
    tpu.vector_store %arg4[%c0_5, %c0_6], %6 {strides = array<i32>} : memref<128x8xf32, #tpu.memory_space<vmem>>, vector<128x8xf32>,
    return
  }
  func.func @transform_0(%arg0: i32) -> (i32, i32) {
    %c0_i32 = arith.constant 0 : i32
    %c0_i32_0 = arith.constant 0 : i32
    return %arg0, %c0_i32 : i32, i32
  }
  func.func @transform_1(%arg0: i32) -> (i32, i32) {
    %c0_i32 = arith.constant 0 : i32
    %c0_i32_0 = arith.constant 0 : i32
    %c0_i32_1 = arith.constant 0 : i32
    return %c0_i32, %c0_i32_0 : i32, i32
  }
  func.func @transform_2(%arg0: i32) -> (i32, i32) {
    %c0_i32 = arith.constant 0 : i32
    %c0_i32_0 = arith.constant 0 : i32
    return %arg0, %c0_i32 : i32, i32
  }
  func.func @transform_3(%arg0: i32) -> (i32, i32) {
    %c0_i32 = arith.constant 0 : i32
    %c0_i32_0 = arith.constant 0 : i32
    return %arg0, %c0_i32 : i32, i32
  }
}

</mosaic_0001>

<bundles_post_ra>
// kernel: tpu_custom_call.1
= control target key start
LH: loop header
LB: loop body
LE: loop exit
PB: predicated region body
PF: predicated region fallthrough
CT: control target
= control target key end

     0   :  { %9 = vsyncpa [#allocation3], 0  ;;  %s1098_s0 = inlined_call_operand.vmem [shape: f32[256,32], index: 0, kind: input, shape index: {}]   ;;  %s1099_s1 = inlined_call_operand.vmem [shape: f32[32,136], index: 1, kind: input, shape index: {}]   ;;  %s1100_s2 = inlined_call_operand.hbm [shape: bf16[256,128], index: 2, kind: output, shape index: {0}]   ;;  %s1101_s3 = inlined_call_operand.vmem [shape: f32[256,8], index: 3, kind: output, shape index: {1}]  }
   0x1   :  { %11 = vsyncpa [#allocation3 + $0x1], 0  ;;  %s879_s12 = smov 0   ;;  %s881_s13 = smov 0  }
   0x2   :  { %s883_s14 = smov 0   ;;  %s885_s15 = smov 0  }
   0x3 LB: > { %s900_s16 = sadd.s32 4294967295, %s853_s15   ;;  %s627_s17 = sadd.s32 4294967294, %s853_s15   ;;  %s853_s15 = sphi %s885_s15, %s1107_s15   ;;  %s849_s14 = sphi %s883_s14, %s1106_s14   ;;  %s845_s13 = sphi %s881_s13, %s1105_s13   ;;  %s841_s12 = sphi %s879_s12, %s1104_s12  }
   0x4   : > { %s904_s18 = sadd.s32 1, %s853_s15   ;;  %s71_s19 = sadd.s32 1, %s849_s14 }
   0x5   : > { %s68_s20 = ssub.s32 %s853_s15, %s904_s18  ;;  %p81_p0 = scmp.ne.s32.totalorder %s849_s14, %s845_s13 }
   0x6   : > { %p69_p1 = scmp.eq.s32.totalorder %s68_s20, 0  ;;  %p82_p2 = scmp.eq.s32.totalorder %s900_s16, 1 }
   0x7   : > { %p87_p3 = scmp.ne.s32.totalorder %s845_s13, %s841_s12  ;;  %p88_p4 = scmp.eq.s32.totalorder %s627_s17, 1 }
   0x8   : > { %s915_s21 = scalar_select %p69_p1, %s849_s14, %s71_s19  }
   0x9   : > { %p917_p5 = por %p82_p2, %p81_p0  ;;  %p921_p6 = por %p88_p4, %p87_p3 }
   0xa   : > { %p630_p7 = scmp.ge.s32.totalorder %s853_s15, 1  ;;  %p144_p8 = scmp.lt.s32.totalorder %s853_s15, 3 }
   0xc   : > { %p145_p9 = pnand %p630_p7, %p144_p8 }
   0xd   : > { %v203_v0 = vld [vmem:[%s1099_s1 + $0x8] sm:$0xff] (!%p145_p9)  ;;  %v205_v1 = vld [vmem:[%s1099_s1 + $0x18] sm:$0xff] (!%p145_p9)  ;;  %v202_v2 = vld [vmem:[%s1099_s1] sm:$0xff] (!%p145_p9)  ;;  %s632_s30 = sshll.u32 (!%p145_p9), %s900_s16, 4  ;;  %v855_v7 = vmov (!%p145_p9), 0.0   ;;  %vm210_vm0 = vcmask (!%p145_p9), 261120  }
   0xe   : > { %148 = sbr.rel (%p145_p9) target bundleno = 283 (0x11b), region = 28  ;;  %v737_v3 = vpack.c.bf16 (!%p145_p9), %v205_v1, %v203_v0  ;;  %v204_v4 = vld [vmem:[%s1099_s1 + $0x10] sm:$0xff] (!%p145_p9)  ;;  %v207_v5 = vld [vmem:[%s1099_s1 + $0x28] sm:$0xff] (!%p145_p9)  ;;  %v209_v6 = vld [vmem:[%s1099_s1 + $0x38] sm:$0xff] (!%p145_p9)  ;;  %323 = vmatprep.mubr.f32.mxu0 (!%p145_p9), %v855_v7  ;;  %371 = vmatprep.mubr.f32.mxu1 (!%p145_p9), %v855_v7  ;;  %p174_p10 = scmp.lt.s32.totalorder (!%p145_p9), %s632_s30, 31  ;;  %vm500_vm1 = vcmask (!%p145_p9), 64512  }
   0xf   : > { %v739_v8 = vpack.c.bf16 (!%p145_p9), %v204_v4, %v202_v2  ;;  %v741_v9 = vpack.c.bf16 (!%p145_p9), %v209_v6, %v207_v5  ;;  %v206_v10 = vld [vmem:[%s1099_s1 + $0x20] sm:$0xff] (!%p145_p9)  ;;  %v208_v11 = vld [vmem:[%s1099_s1 + $0x30] sm:$0xff] (!%p145_p9)  ;;  %s163_s27 = sand.u32 (!%p145_p9), 1, %s845_s13   ;;  %s689_s6 = sshll.u32 (!%p145_p9), %s900_s16, 10 }
  0x10   : > { %738 = vmatprep.subr.bf16.mxu0 (!%p145_p9), %v737_v3  ;;  %745 = vmatprep.subr.bf16.mxu1 (!%p145_p9), %v737_v3  ;;  %v743_v12 = vpack.c.bf16 (!%p145_p9), %v208_v11, %v206_v10  ;;  %s631_s5 = sshll.u32 (!%p145_p9), %s163_s27, 6  ;;  %s1045_s10 = scalar_lea.hbm (!%p145_p9), %s1100_s2, %s689_s6 }
  0x11   : > { %740 = vmatpush1.bf16.msra.mxu0 (!%p145_p9), %v739_v8  ;;  %747 = vmatpush1.bf16.msra.mxu1 (!%p145_p9), %v739_v8  ;;  %s1057_s16 = scalar_lea.sflag (!%p145_p9), [#allocation3], %s163_s27  ;;  %s856_s17 = smov (!%p145_p9), [#allocation2]  }
  0x12   : > { %742 = vmatprep.subr.bf16.mxu0 (!%p145_p9), %v741_v9  ;;  %746 = vmatprep.subr.bf16.mxu1 (!%p145_p9), %v741_v9  ;;  %s795_s19 = sshll.u32 (!%p145_p9), %s856_s17, 4  ;;  %s796_s19 = int_to_ptr.vmem [resolvable:$false] %s795_s19 }
  0x15   : > { %s1109_s30 = smov (!%p174_p10, %s632_s30), 31  ;;  %744 = vmatpush1.bf16.msra.mxu0 %v743_v12  ;;  %748 = vmatpush1.bf16.msra.mxu1 %v743_v12 }
  0x16   : > { %s633_s20 = sshll.u32 %s1109_s30, 3  ;;  %s1012_s30 = scalar_lea.vmem [#allocation2], %s631_s5 }
  0x17   : > { %s960_s26 = scalar_lea.vmem %s1098_s0, %s633_s20  ;;  %s1000_s4 = scalar_lea.vmem %s1101_s3, %s633_s20 }
  0x18   : > { %v186_v13 = vld [vmem:[%s960_s26] sm:$0xff]  ;;  %v187_v15 = vld [vmem:[%s960_s26 + $0x8] sm:$0xff]  ;;  %v188_v17 = vld [vmem:[%s960_s26 + $0x10] sm:$0xff]  ;;  %s536_s7 = sshll.u32 %s1012_s30, 4  ;;  %s797_s20 = scalar_lea.vmem %s796_s19, 2048  ;;  %s1047_s7 = int_to_ptr.vmem [resolvable:$true] %s536_s7 }
  0x19   : > { %v194_v14 = vld [vmem:[%s960_s26 + $0x40] sm:$0xff]  ;;  %636 = vmatmul.mubr.msk.f32.vlgmr.msra.gmra.mrb[0].mxu0 %vm210_vm0, %v186_v13  ;;  %v195_v16 = vld [vmem:[%s960_s26 + $0x48] sm:$0xff]  ;;  %v196_v18 = vld [vmem:[%s960_s26 + $0x50] sm:$0xff]  ;;  %s791_s11 = scalar_lea.vmem %s1047_s7, 1024  ;;  %p798_p0 = scmp.lt.s32.totalorder %s1047_s7, %s796_s19 }
  0x1a   : > { %644 = vmatmul.mubr.msk.f32.vlgmr.msra.gmra.mrb[0].mxu1 %vm210_vm0, %v194_v14  ;;  %329 = vmatprep.mubr.f32.mxu0 %v855_v7  ;;  %v189_v19 = vld [vmem:[%s960_s26 + $0x18] sm:$0xff]  ;;  %v190_v21 = vld [vmem:[%s960_s26 + $0x20] sm:$0xff]  ;;  %v191_v23 = vld [vmem:[%s960_s26 + $0x28] sm:$0xff]  ;;  %p792_p11 = scmp.ne.s32.totalorder %s1047_s7, %s791_s11  ;;  %p799_p1 = scmp.lt.s32.totalorder %s797_s20, %s791_s11 }
  0x1b   : > { %377 = vmatprep.mubr.f32.mxu1 %v855_v7  ;;  %v197_v20 = vld [vmem:[%s960_s26 + $0x58] sm:$0xff]  ;;  %v198_v22 = vld [vmem:[%s960_s26 + $0x60] sm:$0xff]  ;;  %v199_v24 = vld [vmem:[%s960_s26 + $0x68] sm:$0xff] }
  0x1c   : > { %v192_v25 = vld [vmem:[%s960_s26 + $0x30] sm:$0xff]  ;;  %v193_v27 = vld [vmem:[%s960_s26 + $0x38] sm:$0xff]  ;;  %p793_p12 = pnand %p792_p11, %p917_p5  ;;  %p800_p2 = por %p799_p1, %p798_p0 }
  0x1d   : > { %637 = vmatmul.mubr.msk.f32.gmra.mrb[2].mxu0 %vm210_vm0, %v187_v15  ;;  %v200_v26 = vld [vmem:[%s960_s26 + $0x70] sm:$0xff]  ;;  %v201_v28 = vld [vmem:[%s960_s26 + $0x78] sm:$0xff] }
  0x1e   : > { %645 = vmatmul.mubr.msk.f32.gmra.mrb[2].mxu1 %vm210_vm0, %v195_v16  ;;  %335 = vmatprep.mubr.f32.mxu0 %v855_v7  ;;  %p794_p13 = pneg %p793_p12 }
  0x1f   : > { %383 = vmatprep.mubr.f32.mxu1 %v855_v7 }
  0x20   : > { %p801_p3 = pnand %p800_p2, %p794_p13 }
  0x21   : > { %638 = vmatmul.mubr.msk.f32.gmra.mrb[4].mxu0 %vm210_vm0, %v188_v17 }
  0x22   : > { %646 = vmatmul.mubr.msk.f32.gmra.mrb[4].mxu1 %vm210_vm0, %v196_v18  ;;  %341 = vmatprep.mubr.f32.mxu0 %v855_v7 }
  0x23   : > { %389 = vmatprep.mubr.f32.mxu1 %v855_v7 }
  0x25   : > { %639 = vmatmul.mubr.msk.f32.gmra.mrb[6].mxu0 %vm210_vm0, %v189_v19 }
  0x26   : > { %647 = vmatmul.mubr.msk.f32.gmra.mrb[6].mxu1 %vm210_vm0, %v197_v20  ;;  %347 = vmatprep.mubr.f32.mxu0 %v855_v7 }
  0x27   : > { %395 = vmatprep.mubr.f32.mxu1 %v855_v7 }
  0x29   : > { %640 = vmatmul.mubr.msk.f32.gmra.mrb[8].mxu0 %vm210_vm0, %v190_v21 }
  0x2a   : > { %648 = vmatmul.mubr.msk.f32.gmra.mrb[8].mxu1 %vm210_vm0, %v198_v22  ;;  %353 = vmatprep.mubr.f32.mxu0 %v855_v7 }
  0x2b   : > { %401 = vmatprep.mubr.f32.mxu1 %v855_v7 }
  0x2d   : > { %641 = vmatmul.mubr.msk.f32.gmra.mrb[10].mxu0 %vm210_vm0, %v191_v23 }
  0x2e   : > { %649 = vmatmul.mubr.msk.f32.gmra.mrb[10].mxu1 %vm210_vm0, %v199_v24  ;;  %359 = vmatprep.mubr.f32.mxu0 %v855_v7 }
  0x2f   : > { %407 = vmatprep.mubr.f32.mxu1 %v855_v7 }
  0x31   : > { %642 = vmatmul.mubr.msk.f32.gmra.mrb[12].mxu0 %vm210_vm0, %v192_v25 }
  0x32   : > { %650 = vmatmul.mubr.msk.f32.gmra.mrb[12].mxu1 %vm210_vm0, %v200_v26  ;;  %365 = vmatprep.mubr.f32.mxu0 %v855_v7 }
  0x33   : > { %413 = vmatprep.mubr.f32.mxu1 %v855_v7 }
  0x35   : > { %643 = vmatmul.mubr.msk.f32.gmra.mrb[14].mxu0 %vm210_vm0, %v193_v27 }
  0x36   : > { %651 = vmatmul.mubr.msk.f32.gmra.mrb[14].mxu1 %vm210_vm0, %v201_v28 }
  0xec   : > { %v325_v29 = vpop.f32.mrb[0].mxu0 }
  0xed   : > { %v373_v30 = vpop.f32.mrb[0].mxu1  ;;  %v327_v31 = vpop.f32.mrb[1].mxu0 }
  0xee   : > { %v375_v32 = vpop.f32.mrb[1].mxu1  ;;  %501 = vst.msk [vmem:[%s1000_s4] sm:$0xff] %vm500_vm1, %v327_v31 }
  0xef   : > { %509 = vst.msk [vmem:[%s1000_s4 + $0x40] sm:$0xff] %vm500_vm1, %v375_v32 }
  0xf0   : > { %v331_v33 = vpop.f32.mrb[2].mxu0 }
  0xf1   : > { %v379_v34 = vpop.f32.mrb[2].mxu1  ;;  %v693_v35 = vpack.c.bf16 %v331_v33, %v325_v29  ;;  %v333_v37 = vpop.f32.mrb[3].mxu0 }
  0xf2   : > { %v713_v36 = vpack.c.bf16 %v379_v34, %v373_v30  ;;  %v381_v38 = vpop.f32.mrb[3].mxu1  ;;  %502 = vst.msk [vmem:[%s1000_s4 + $0x8] sm:$0xff] %vm500_vm1, %v333_v37 }
  0xf3   : > { %510 = vst.msk [vmem:[%s1000_s4 + $0x48] sm:$0xff] %vm500_vm1, %v381_v38  ;;  %694 = vst [vmem:[%s1012_s30] sm:$0xff] %v693_v35  }
  0xf4   : > { %733 = vst [vmem:[%s1012_s30 + $0x20] sm:$0xff] %v713_v36   ;;  %v337_v39 = vpop.f32.mrb[4].mxu0 }
  0xf5   : > { %v385_v40 = vpop.f32.mrb[4].mxu1  ;;  %v339_v41 = vpop.f32.mrb[5].mxu0 }
  0xf6   : > { %v387_v42 = vpop.f32.mrb[5].mxu1  ;;  %503 = vst.msk [vmem:[%s1000_s4 + $0x10] sm:$0xff] %vm500_vm1, %v339_v41 }
  0xf7   : > { %511 = vst.msk [vmem:[%s1000_s4 + $0x50] sm:$0xff] %vm500_vm1, %v387_v42 }
  0xf8   : > { %v343_v43 = vpop.f32.mrb[6].mxu0 }
  0xf9   : > { %v391_v44 = vpop.f32.mrb[6].mxu1  ;;  %v698_v45 = vpack.c.bf16 %v343_v43, %v337_v39  ;;  %v345_v47 = vpop.f32.mrb[7].mxu0 }
  0xfa   : > { %v718_v46 = vpack.c.bf16 %v391_v44, %v385_v40  ;;  %v393_v48 = vpop.f32.mrb[7].mxu1  ;;  %504 = vst.msk [vmem:[%s1000_s4 + $0x18] sm:$0xff] %vm500_vm1, %v345_v47 }
  0xfb   : > { %512 = vst.msk [vmem:[%s1000_s4 + $0x58] sm:$0xff] %vm500_vm1, %v393_v48  ;;  %730 = vst [vmem:[%s1012_s30 + $0x8] sm:$0xff] %v698_v45  }
  0xfc   : > { %734 = vst [vmem:[%s1012_s30 + $0x28] sm:$0xff] %v718_v46   ;;  %v349_v49 = vpop.f32.mrb[8].mxu0 }
  0xfd   : > { %v397_v50 = vpop.f32.mrb[8].mxu1  ;;  %v351_v51 = vpop.f32.mrb[9].mxu0 }
  0xfe   : > { %v399_v52 = vpop.f32.mrb[9].mxu1  ;;  %505 = vst.msk [vmem:[%s1000_s4 + $0x20] sm:$0xff] %vm500_vm1, %v351_v51 }
  0xff   : > { %513 = vst.msk [vmem:[%s1000_s4 + $0x60] sm:$0xff] %vm500_vm1, %v399_v52 }
 0x100   : > { %v355_v53 = vpop.f32.mrb[10].mxu0 }
 0x101   : > { %v403_v54 = vpop.f32.mrb[10].mxu1  ;;  %v703_v55 = vpack.c.bf16 %v355_v53, %v349_v49  ;;  %v357_v57 = vpop.f32.mrb[11].mxu0 }
 0x102   : > { %v723_v56 = vpack.c.bf16 %v403_v54, %v397_v50  ;;  %v405_v58 = vpop.f32.mrb[11].mxu1  ;;  %506 = vst.msk [vmem:[%s1000_s4 + $0x28] sm:$0xff] %vm500_vm1, %v357_v57 }
 0x103   : > { %514 = vst.msk [vmem:[%s1000_s4 + $0x68] sm:$0xff] %vm500_vm1, %v405_v58  ;;  %731 = vst [vmem:[%s1012_s30 + $0x10] sm:$0xff] %v703_v55  }
 0x104   : > { %735 = vst [vmem:[%s1012_s30 + $0x30] sm:$0xff] %v723_v56   ;;  %v361_v59 = vpop.f32.mrb[12].mxu0 }
 0x105   : > { %v409_v60 = vpop.f32.mrb[12].mxu1  ;;  %v363_v61 = vpop.f32.mrb[13].mxu0 }
 0x106   : > { %v411_v62 = vpop.f32.mrb[13].mxu1  ;;  %507 = vst.msk [vmem:[%s1000_s4 + $0x30] sm:$0xff] %vm500_vm1, %v363_v61 }
 0x107   : > { %515 = vst.msk [vmem:[%s1000_s4 + $0x70] sm:$0xff] %vm500_vm1, %v411_v62 }
 0x108   : > { %v367_v63 = vpop.f32.mrb[14].mxu0 }
 0x109   : > { %v415_v0 = vpop.f32.mrb[14].mxu1  ;;  %v708_v1 = vpack.c.bf16 %v367_v63, %v361_v59  ;;  %v369_v3 = vpop.f32.mrb[15].mxu0 }
 0x10a   : > { %v728_v2 = vpack.c.bf16 %v415_v0, %v409_v60  ;;  %v417_v4 = vpop.f32.mrb[15].mxu1  ;;  %508 = vst.msk [vmem:[%s1000_s4 + $0x38] sm:$0xff] %vm500_vm1, %v369_v3 }
 0x10b   : > { %516 = vst.msk [vmem:[%s1000_s4 + $0x78] sm:$0xff] %vm500_vm1, %v417_v4  ;;  %732 = vst [vmem:[%s1012_s30 + $0x18] sm:$0xff] %v708_v1  }
 0x10c   : > { %736 = vst [vmem:[%s1012_s30 + $0x38] sm:$0xff] %v728_v2  }
 0x10d   : > { %804 = shalt.err (!%p801_p3)
}
 0x10e   : > { %s805_s24 = scalar_lea.hbm %s1045_s10, 1024  ;;  %s809_s27 = scalar_lea.hbm %s1100_s2, 2048 }
 0x10f   : > { %p806_p4 = scmp.ne.s32.totalorder %s1045_s10, %s805_s24  ;;  %p810_p9 = scmp.lt.u32.totalorder %s1045_s10, %s1100_s2 }
 0x110   : > { %p811_p10 = scmp.lt.u32.totalorder %s809_s27, %s805_s24  ;;  %p813_p12 = scmp.lt.u32.totalorder %s805_s24, %s1045_s10 }
 0x111   : > { %p807_p7 = pnand %p806_p4, %p917_p5 }
 0x112   : > { %p812_p11 = por %p811_p10, %p810_p9 }
 0x113   : > { %p808_p8 = pneg %p807_p7 }
 0x114   : > { %p814_p13 = por %p813_p12, %p812_p11 }
 0x116   : > { %p815_p0 = pnand %p814_p13, %p808_p8 }
 0x118   : > { %818 = shalt.err (!%p815_p0)
}
 0x119   : > { %s857_s4 = smov 64   ;;  %s858_s5 = smov 4  }
 0x11a   : > { %749 = dma.vmem_to_hbm [thread:$0]  (%p917_p5), %s1047_s7, 1024, %s1045_s10, %s1057_s16, %s857_s4, %s857_s4, %s858_s5  }
 0x11b PF: > { %p755_p1 = scmp.ge.s32.totalorder %s853_s15, 2  ;;  %s555_s30 = sand.u32 1, %s841_s12  }
 0x11c   : > { %s556_s6 = scalar_lea.sflag [#allocation3], %s555_s30 }
 0x11d   : > { %p752_p2 = pnand %p755_p1, %p921_p6 }
 0x11f   : > { %836 = dma.done.wait (!%p752_p2), %s556_s6, 1024  }
 0x120   : > { %838 = vsyncadd (!%p752_p2), %s556_s6, 4294966272  ;;  %p14_p3 = scmp.ge.s32.totalorder %s904_s18, 4   ;;  %s1104_s12 = smov %s845_s13 }
 0x121   : > { %s1105_s13 = smov %s849_s14  ;;  %s1106_s14 = smov %s915_s21 }
 0x122   : > { %s1107_s15 = smov %s904_s18  ;;  %16 = sbr.rel (!%p14_p3) target bundleno = 3 (0x3), region = 75 }
 0x129   :  { %569 = vsyncpa [#allocation3], 1 }
 0x12a   :  { %571 = vsyncpa [#allocation3 + $0x1], 1 }

</bundles_post_ra>
